<compile_context>
chip_gen: v6e
topology: v6e:2x2x1
jax: 0.10.0
libtpu: 0.0.40
codegen_flags: <defaults>
</compile_context>

<pallas_src>
import jax
import jax.numpy as jnp
import numpy as np
from jax.experimental import pallas as pl
from jax.experimental.pallas import tpu as pltpu

LANE = 128
CONV_DTYPE = jnp.float32   # set to jnp.bfloat16 on v6e/v7x for higher MXU throughput
_VMEM_LIMIT = 48 * 1024 * 1024


def _round_up(v, m):
    return (v + m - 1) // m * m


# --------------------- pass 1: BatchNorm batch statistics (sum, sumsq) ---------------------

def _bn_stats_kernel(x_ref, s_ref):
    @pl.when(pl.program_id(0) == 0)
    def _():
        s_ref[...] = jnp.zeros_like(s_ref)
    x = x_ref[...]                                           # (row_tile, C)
    s_ref[...] += jnp.concatenate(
        [jnp.sum(x, axis=0, keepdims=True),
         jnp.sum(x * x, axis=0, keepdims=True)], axis=0)     # (2, C)


def _bn_batch_stats(x2d, row_tile=256):
    """x2d: (R, C) f32 with C a multiple of 128. Returns (2, C): [sum; sum of squares]."""
    R, C = x2d.shape
    rp = _round_up(R, row_tile)
    if rp != R:
        # zero rows contribute 0 to both sums; caller divides by the true count
        x2d = jnp.pad(x2d, ((0, rp - R), (0, 0)))
    return pl.pallas_call(
        _bn_stats_kernel,
        out_shape=jax.ShapeDtypeStruct((2, C), jnp.float32),
        grid=(rp // row_tile,),
        in_specs=[pl.BlockSpec((row_tile, C), lambda i: (i, 0))],
        out_specs=pl.BlockSpec((2, C), lambda i: (0, 0)),
        compiler_params=pltpu.CompilerParams(
            dimension_semantics=("arbitrary",),
            vmem_limit_bytes=_VMEM_LIMIT),
    )(x2d)


# ------------- pass 2: BN-apply + conv1(3x3) + SiLU + conv2(3x3) + folded shortcut -------------

def _residual_block_kernel(x_ref, scale_ref, shift_ref, w1_ref, b1_ref,
                           w2s_ref, b2s_ref, o_ref,
                           xp_ref, hp_ref, col1_ref, col2_ref):
    _, H, W, Cin = x_ref.shape
    Cout = o_ref.shape[3]
    HW = H * W

    # Zero only the 1-pixel halo border of the padded scratch buffers; interiors are
    # fully rewritten below.  Done every step so the kernel stays correct when the
    # batch grid axis is sharded across TensorCores (scratch is per-core).
    for ref, c in ((xp_ref, Cin), (hp_ref, Cout)):
        ref[0:1, :, :] = jnp.zeros((1, W + 2, c), jnp.float32)
        ref[H + 1:H + 2, :, :] = jnp.zeros((1, W + 2, c), jnp.float32)
        ref[:, 0:1, :] = jnp.zeros((H + 2, 1, c), jnp.float32)
        ref[:, W + 1:W + 2, :] = jnp.zeros((H + 2, 1, c), jnp.float32)

    x = x_ref[0]                                             # (H, W, Cin) raw input

    # BatchNorm2d (training-mode batch stats, affine=False) as per-channel FMA.
    xp_ref[1:H + 1, 1:W + 1, :] = x * scale_ref[0] + shift_ref[0]

    # conv1 (3x3, padding='same'): one fused im2col matmul, K = 9*Cin.
    for k in range(9):
        dh, dw = divmod(k, 3)
        col1_ref[:, k * Cin:(k + 1) * Cin] = (
            xp_ref[dh:dh + H, dw:dw + W, :].reshape(HW, Cin).astype(col1_ref.dtype))
    h = jnp.dot(col1_ref[...], w1_ref[...],
                preferred_element_type=jnp.float32) + b1_ref[...]

    # SiLU: exp goes to the EUP; use pl.reciprocal instead of a VPU divide.
    h = h * pl.reciprocal(1.0 + jnp.exp(-h))

    # conv2 (3x3, 'same') with the 1x1 shortcut folded in: K = 9*Cout + Cin.
    hp_ref[1:H + 1, 1:W + 1, :] = h.reshape(H, W, Cout)
    for k in range(9):
        dh, dw = divmod(k, 3)
        col2_ref[:, k * Cout:(k + 1) * Cout] = (
            hp_ref[dh:dh + H, dw:dw + W, :].reshape(HW, Cout).astype(col2_ref.dtype))
    col2_ref[:, 9 * Cout:9 * Cout + Cin] = x.reshape(HW, Cin).astype(col2_ref.dtype)

    out = jnp.dot(col2_ref[...], w2s_ref[...],
                  preferred_element_type=jnp.float32) + b2s_ref[...]
    o_ref[...] = out.reshape(1, H, W, Cout)                  # lane-dense (Cout=128k) store


# ----------------------------------- parameters & wrapper -----------------------------------

def init_residual_block_params(key, cin, cout):
    k1, k2, k3, k4, k5, k6 = jax.random.split(key, 6)
    p = {
        "w1": 0.1 * jax.random.normal(k1, (3, 3, cin, cout), jnp.float32),   # [dh,dw,ci,co]
        "b1": 0.1 * jax.random.normal(k2, (cout,), jnp.float32),
        "w2": 0.1 * jax.random.normal(k3, (3, 3, cout, cout), jnp.float32),
        "b2": 0.1 * jax.random.normal(k4, (cout,), jnp.float32),
    }
    if cin != cout:
        p["ws"] = 0.1 * jax.random.normal(k5, (cin, cout), jnp.float32)      # 1x1 shortcut
        p["bs"] = 0.1 * jax.random.normal(k6, (cout,), jnp.float32)
    else:
        p["ws"] = None   # nn.Sequential() identity shortcut
        p["bs"] = None
    return p


def _prepare_kernel_params(p, cin, cout):
    """Pad channels to lane multiples, fuse taps into im2col weight matrices, and
    fold the 1x1 shortcut (identity when cin==cout) into the conv2 matmul."""
    cin_p = _round_up(cin, LANE)
    cout_p = _round_up(cout, LANE)

    w1 = jnp.zeros((3, 3, cin_p, cout_p), jnp.float32).at[:, :, :cin, :cout].set(p["w1"])
    w1 = w1.reshape(9 * cin_p, cout_p)                       # row = (dh*3+dw)*cin_p + ci
    b1 = jnp.zeros((1, cout_p), jnp.float32).at[0, :cout].set(p["b1"])

    w2 = jnp.zeros((3, 3, cout_p, cout_p), jnp.float32).at[:, :, :cout, :cout].set(p["w2"])
    w2 = w2.reshape(9 * cout_p, cout_p)
    ws = p["ws"] if p["ws"] is not None else jnp.eye(cout, dtype=jnp.float32)
    bs = p["bs"] if p["bs"] is not None else jnp.zeros((cout,), jnp.float32)
    ws_p = jnp.zeros((cin_p, cout_p), jnp.float32).at[:cin, :cout].set(ws)
    w2s = jnp.concatenate([w2, ws_p], axis=0)                # (9*cout_p + cin_p, cout_p)
    b2s = jnp.zeros((1, cout_p), jnp.float32).at[0, :cout].set(p["b2"] + bs)

    # NOTE: when CONV_DTYPE is bf16, keep the shortcut in f32 if exact skip preservation
    # is required; with the default f32 the fold is exact.
    return w1.astype(CONV_DTYPE), b1, w2s.astype(CONV_DTYPE), b2s, cin_p, cout_p


def residual_block_forward(x_nchw, p, eps=1e-3):
    """ResidualBlock.forward for NCHW f32 input (PyTorch layout)."""
    N, Cin, H, W = x_nchw.shape
    Cout = p["b1"].shape[0]
    w1, b1, w2s, b2s, cin_p, cout_p = _prepare_kernel_params(p, Cin, Cout)

    # NCHW -> NHWC, pad channels once to a lane multiple.
    x = jnp.transpose(x_nchw, (0, 2, 3, 1))
    x = jnp.pad(x, ((0, 0), (0, 0), (0, 0), (0, cin_p - Cin)))

    # Pass 1: BN batch statistics (one fused sum / sum-of-squares reduction).
    sums = _bn_batch_stats(x.reshape(N * H * W, cin_p))
    count = float(N * H * W)
    mean = sums[0:1] / count
    var = jnp.maximum(sums[1:2] / count - mean * mean, 0.0)  # biased variance (BN)
    scale = jax.lax.rsqrt(var + eps)                         # (1, cin_p)
    shift = -mean * scale

    # Pass 2: fused BN-apply + conv1 + SiLU + conv2 + shortcut, one image per grid step.
    out = pl.pallas_call(
        _residual_block_kernel,
        out_shape=jax.ShapeDtypeStruct((N, H, W, cout_p), jnp.float32),
        grid=(N,),
        in_specs=[
            pl.BlockSpec((1, H, W, cin_p), lambda n: (n, 0, 0, 0)),
            pl.BlockSpec((1, cin_p), lambda n: (0, 0)),
            pl.BlockSpec((1, cin_p), lambda n: (0, 0)),
            pl.BlockSpec((9 * cin_p, cout_p), lambda n: (0, 0)),
            pl.BlockSpec((1, cout_p), lambda n: (0, 0)),
            pl.BlockSpec((9 * cout_p + cin_p, cout_p), lambda n: (0, 0)),
            pl.BlockSpec((1, cout_p), lambda n: (0, 0)),
        ],
        out_specs=pl.BlockSpec((1, H, W, cout_p), lambda n: (n, 0, 0, 0)),
        scratch_shapes=[
            pltpu.VMEM((H + 2, W + 2, cin_p), jnp.float32),          # padded BN'd input
            pltpu.VMEM((H + 2, W + 2, cout_p), jnp.float32),         # padded SiLU(conv1)
            pltpu.VMEM((H * W, 9 * cin_p), CONV_DTYPE),              # im2col for conv1
            pltpu.VMEM((H * W, 9 * cout_p + cin_p), CONV_DTYPE),     # im2col for conv2+skip
        ],
        compiler_params=pltpu.CompilerParams(
            dimension_semantics=("parallel",),
            vmem_limit_bytes=_VMEM_LIMIT),
    )(x, scale, shift, w1, b1, w2s, b2s)

    # Drop channel padding, back to NCHW.
    return jnp.transpose(out[..., :Cout], (0, 3, 1, 2))


# ------------------------------ pure-JAX reference (for checking) ------------------------------

def _ref_residual_block(x_nchw, p, eps=1e-3):
    x = jnp.transpose(x_nchw, (0, 2, 3, 1))                  # NHWC
    N, H, W, Cin = x.shape

    if p["ws"] is not None:
        residual = jnp.einsum("nhwc,cd->nhwd", x, p["ws"]) + p["bs"]
    else:
        residual = x

    mean = jnp.mean(x, axis=(0, 1, 2), keepdims=True)
    var = jnp.mean((x - mean) ** 2, axis=(0, 1, 2), keepdims=True)
    xn = (x - mean) / jnp.sqrt(var + eps)

    def conv3x3(inp, w, b):
        xp = jnp.pad(inp, ((0, 0), (1, 1), (1, 1), (0, 0)))
        out = jnp.zeros((N, H, W, w.shape[-1]), jnp.float32)
        for dh in range(3):
            for dw in range(3):
                out = out + jnp.einsum("nhwc,cd->nhwd",
                                       xp[:, dh:dh + H, dw:dw + W, :], w[dh, dw])
        return out + b

    h = conv3x3(xn, p["w1"], p["b1"])
    h = h * jax.nn.sigmoid(h)
    out = conv3x3(h, p["w2"], p["b2"]) + residual
    return jnp.transpose(out, (0, 3, 1, 2))


# --------------------------------------------- main ---------------------------------------------

if __name__ == "__main__":
    key = jax.random.PRNGKey(0)
    kx1, kp1, kx2, kp2 = jax.random.split(key, 4)

    # case 1: in_channels != out_channels (real 1x1 shortcut conv)
    N, C_in, H, W = 2, 4, 16, 16
    C_out = 8
    x1 = jax.random.normal(kx1, (N, C_in, H, W), jnp.float32)
    p1 = init_residual_block_params(kp1, C_in, C_out)
    out1 = jax.block_until_ready(residual_block_forward(x1, p1))
    assert out1.shape == (N, C_out, H, W)
    ref1 = _ref_residual_block(x1, p1)
    np.testing.assert_allclose(np.asarray(out1), np.asarray(ref1), rtol=1e-3, atol=1e-3)

    # case 2: in_channels == out_channels (identity shortcut)
    x2 = jax.random.normal(kx2, (N, C_out, H, W), jnp.float32)
    p2 = init_residual_block_params(kp2, C_out, C_out)
    out2 = jax.block_until_ready(residual_block_forward(x2, p2))
    assert out2.shape == (N, C_out, H, W)
    ref2 = _ref_residual_block(x2, p2)
    np.testing.assert_allclose(np.asarray(out2), np.asarray(ref2), rtol=1e-3, atol=1e-3)

    print("KERNEL_OK")
</pallas_src>

<mosaic_0001>
module attributes {stable_mosaic.version = 11 : i64} {
  func.func @_bn_stats_kernel(%arg0: i32, %arg1: memref<256x128xf32, #tpu.memory_space<vmem>>, %arg2: memref<2x128xf32, #tpu.memory_space<vmem>>) attributes {dimension_semantics = [#tpu.dimension_semantics<arbitrary>], iteration_bounds = array<i64: 2>, scalar_prefetch = 0 : i64, scratch_operands = 0 : i64, tpu.core_type = #tpu.core_type<tc>, window_params = [{transform_indices = @transform_0, window_bounds = array<i64: 256, 128>}, {pipeline_mode = #tpu.pipeline_mode<synchronous>, transform_indices = @transform_1, window_bounds = array<i64: 2, 128>}]} {
    %c0_i32 = arith.constant 0 : i32
    %0 = arith.cmpi eq, %arg0, %c0_i32 : i32
    %1 = arith.extui %0 : i1 to i32
    %c0_i32_0 = arith.constant 0 : i32
    %2 = arith.cmpi ne, %1, %c0_i32_0 : i32
    scf.if %2 {
      %cst_7 = arith.constant 0.000000e+00 : f32
      %13 = vector.broadcast %cst_7 : f32 to vector<2x128xf32>
      %c0_8 = arith.constant 0 : index
      %c0_9 = arith.constant 0 : index
      %14 = vector.load %arg2[%c0_8, %c0_9] : memref<2x128xf32, #tpu.memory_space<vmem>>, vector<2x128xf32>
      tpu.vector_store %arg2[%c0_8, %c0_9], %13 {strides = array<i32>} : memref<2x128xf32, #tpu.memory_space<vmem>>, vector<2x128xf32>,
    } else {
    }
    %c0 = arith.constant 0 : index
    %c0_1 = arith.constant 0 : index
    %3 = vector.load %arg1[%c0, %c0_1] : memref<256x128xf32, #tpu.memory_space<vmem>>, vector<256x128xf32>
    %c0_2 = arith.constant 0 : index
    %c0_3 = arith.constant 0 : index
    %4 = vector.load %arg2[%c0_2, %c0_3] : memref<2x128xf32, #tpu.memory_space<vmem>>, vector<2x128xf32>
    %cst = arith.constant dense<0.000000e+00> : vector<128xf32>
    %5 = vector.multi_reduction <add>, %3, %cst [0] : vector<256x128xf32> to vector<128xf32>
    %6 = vector.shape_cast %5 : vector<128xf32> to vector<1x128xf32>
    %7 = arith.mulf %3, %3 : vector<256x128xf32>
    %cst_4 = arith.constant dense<0.000000e+00> : vector<128xf32>
    %8 = vector.multi_reduction <add>, %7, %cst_4 [0] : vector<256x128xf32> to vector<128xf32>
    %9 = vector.shape_cast %8 : vector<128xf32> to vector<1x128xf32>
    %10 = tpu.concatenate %6, %9 in 0 : vector<1x128xf32>, vector<1x128xf32> -> vector<2x128xf32>
    %11 = arith.addf %4, %10 : vector<2x128xf32>
    %c0_5 = arith.constant 0 : index
    %c0_6 = arith.constant 0 : index
    %12 = vector.load %arg2[%c0_5, %c0_6] : memref<2x128xf32, #tpu.memory_space<vmem>>, vector<2x128xf32>
    tpu.vector_store %arg2[%c0_5, %c0_6], %11 {strides = array<i32>} : memref<2x128xf32, #tpu.memory_space<vmem>>, vector<2x128xf32>,
    return
  }
  func.func @transform_0(%arg0: i32) -> (i32, i32) {
    %c0_i32 = arith.constant 0 : i32
    %c0_i32_0 = arith.constant 0 : i32
    return %arg0, %c0_i32 : i32, i32
  }
  func.func @transform_1(%arg0: i32) -> (i32, i32) {
    %c0_i32 = arith.constant 0 : i32
    %c0_i32_0 = arith.constant 0 : i32
    %c0_i32_1 = arith.constant 0 : i32
    return %c0_i32, %c0_i32_0 : i32, i32
  }
}

</mosaic_0001>

<bundles_post_ra>
// kernel: tpu_custom_call.1
= control target key start
LH: loop header
LB: loop body
LE: loop exit
PB: predicated region body
PF: predicated region fallthrough
CT: control target
= control target key end

     0   :  { %6 = vsyncpa [#allocation3], 0  ;;  %s642_s0 = inlined_call_operand.hbm [shape: f32[512,128], index: 0, kind: input, shape index: {}]   ;;  %s643_s1 = inlined_call_operand.hbm [shape: f32[2,128], index: 1, kind: output, shape index: {}]  }
   0x1   :  { %8 = vsyncpa [#allocation3 + $0x1], 0 }
   0x2   :  { %9 = vsyncpa [#allocation4], 0  ;;  %s499_s6 = smov 0   ;;  %s501_s7 = smov 0  }
   0x3   :  { %s503_s8 = smov 0   ;;  %s505_s9 = smov 0  }
   0x4 LB: > { %s518_s10 = sadd.s32 4294967295, %s482_s9   ;;  %s521_s11 = sadd.s32 1, %s482_s9   ;;  %s482_s9 = sphi %s505_s9, %s652_s9   ;;  %s478_s8 = sphi %s503_s8, %s651_s8   ;;  %s474_s7 = sphi %s501_s7, %s650_s7   ;;  %s470_s6 = sphi %s499_s6, %s649_s6  }
   0x5   : > { %s19_s12 = ssub.s32 %s482_s9, %s521_s11  ;;  %s22_s13 = sadd.s32 1, %s478_s8 }
   0x6   : > { %p20_p0 = scmp.eq.s32.totalorder %s19_s12, 0  ;;  %p29_p1 = scmp.ne.s32.totalorder %s478_s8, %s474_s7 }
   0x7   : > { %p30_p2 = scmp.eq.s32.totalorder %s482_s9, 0  ;;  %p35_p3 = scmp.ne.s32.totalorder %s474_s7, %s470_s6 }
   0x8   : > { %s531_s14 = scalar_select %p20_p0, %s478_s8, %s22_s13  }
   0x9   : > { %p31_p4 = por %p30_p2, %p29_p1  ;;  %p36_p5 = scmp.eq.s32.totalorder %s518_s10, 0 }
   0xa   : > { %p353_p6 = scmp.lt.s32.totalorder %s482_s9, 2  ;;  %s80_s16 = sand.u32 1, %s478_s8  }
   0xb   : > { %p535_p7 = por %p36_p5, %p35_p3  ;;  %s332_s17 = sshll.u32 %s80_s16, 8 }
   0xc   : > { %s342_s18 = sshll.u32 %s482_s9, 12  ;;  %s84_s22 = scalar_lea.vmem [#allocation2], %s332_s17 }
   0xd   : > { %s645_s15 = scalar_select %p535_p7, 1, 0 }
   0xe   : > { %s544_s21 = scalar_lea.hbm %s642_s0, %s342_s18  ;;  %s91_s23 = sshll.u32 %s84_s22, 4  ;;  %s546_s23 = int_to_ptr.vmem [resolvable:$true] %s91_s23 }
   0xf   : > { %p548_p8 = pnand %p353_p6, %p31_p4  ;;  %s553_s25 = scalar_lea.sflag [#allocation3], %s80_s16 }
  0x10   : > { %s392_s26 = scalar_lea.hbm %s544_s21, 4096  ;;  %s397_s29 = scalar_lea.hbm %s642_s0, 8192 }
  0x11   : > { %p393_p10 = scmp.ne.s32.totalorder %s544_s21, %s392_s26  ;;  %p394_p11 = pneg %p548_p8 }
  0x12   : > { %p398_p0 = scmp.lt.s32.totalorder %s544_s21, %s642_s0  ;;  %p399_p1 = scmp.lt.s32.totalorder %s397_s29, %s392_s26 }
  0x13   : > { %p395_p12 = pnand %p394_p11, %p393_p10 }
  0x14   : > { %p400_p2 = por %p399_p1, %p398_p0 }
  0x15   : > { %p396_p13 = pneg %p395_p12 }
  0x17   : > { %p401_p3 = pnand %p400_p2, %p396_p13 }
  0x19   : > { %404 = shalt.err (!%p401_p3)
}
  0x1a   : > { %s405_s3 = scalar_lea.vmem %s546_s23, 4096  ;;  %s484_s4 = smov [#allocation2]  }
  0x1b   : > { %p406_p4 = scmp.ne.s32.totalorder %s546_s23, %s405_s3  ;;  %s410_s5 = sshll.u32 %s484_s4, 4  ;;  %s411_s5 = int_to_ptr.vmem [resolvable:$false] %s410_s5 }
  0x1c   : > { %s412_s6 = scalar_lea.vmem %s411_s5, 8192  ;;  %p413_p10 = scmp.lt.s32.totalorder %s546_s23, %s411_s5 }
  0x1d   : > { %p408_p5 = pnand %p406_p4, %p394_p11  ;;  %p414_p12 = scmp.lt.s32.totalorder %s412_s6, %s405_s3 }
  0x1f   : > { %p409_p6 = pneg %p408_p5  ;;  %p415_p9 = por %p414_p12, %p413_p10 }
  0x21   : > { %p416_p7 = pnand %p415_p9, %p409_p6 }
  0x23   : > { %419 = shalt.err (!%p416_p7)
}
  0x24   : > { %s485_s12 = smov 128   ;;  %s486_s13 = smov 8  }
  0x25   : > { %352 = dma.hbm_to_vmem [thread:$0]  (!%p548_p8), %s544_s21, 4096, %s546_s23, %s553_s25, %s485_s12, %s485_s12, %s486_s13  }
  0x26   : > { %p99_p11 = scmp.lt.s32.totalorder %s482_s9, 3  ;;  %p647_p13 = scmp.ge.s32.totalorder %s482_s9, 1 }
  0x28   : > { %p100_p0 = pnand %p647_p13, %p99_p11 }
  0x29   : > { %s105_s16 = sand.u32 (!%p100_p0), 1, %s474_s7   ;;  %p648_p7 = scmp.ne.s32.totalorder (!%p100_p0), %s645_s15, 0 }
  0x2a   : > { %103 = sbr.rel (%p100_p0) target bundleno = 142 (0x8e), region = 24  ;;  %s336_s17 = sshll.u32 (!%p100_p0), %s105_s16, 8 }
  0x2b   : > { %s106_s18 = scalar_lea.sflag (!%p100_p0), [#allocation3], %s105_s16  ;;  %s578_s19 = scalar_lea.vmem (!%p100_p0), [#allocation2], %s336_s17 }
  0x2f   : > { %461 = dma.done.wait (%p648_p7), %s106_s18, 4096  }
  0x30   : > { %463 = vsyncadd (%p648_p7), %s106_s18, 4294963200  ;;  %p337_p9 = scmp.ne.s32.totalorder %s518_s10, 0 }
  0x32   : > { %127 = sbr.rel (%p337_p9) target bundleno = 57 (0x39), region = 32 }
  0x37   : > { %v487_v0 = vmov 0.0  }
  0x38   : > { %128 = vst [vmem:[#allocation5] sm:$0x3] %v487_v0 }
  0x39 PF: > { %v129_v1 = vld [vmem:[%s578_s19] sm:$0xff]  ;;  %v130_v2 = vld [vmem:[%s578_s19 + $0x8] sm:$0xff]  ;;  %v131_v3 = vld [vmem:[%s578_s19 + $0x10] sm:$0xff]  ;;  %vm268_vm0 = vcmask 1040384   ;;  %s488_s9 = smov [#allocation5]   ;;  %p354_p8 = scmp.eq.s32.totalorder %s518_s10, 1 }
  0x3a   : > { %v132_v4 = vld [vmem:[%s578_s19 + $0x18] sm:$0xff]  ;;  %v162_v5 = vadd.f32 %v130_v2, %v129_v1  ;;  %v199_v6 = vmul.f32 %v129_v1, %v129_v1  ;;  %v200_v7 = vmul.f32 %v130_v2, %v130_v2  ;;  %v201_v8 = vmul.f32 %v131_v3, %v131_v3  ;;  %v133_v9 = vld [vmem:[%s578_s19 + $0x20] sm:$0xff]  ;;  %v134_v13 = vld [vmem:[%s578_s19 + $0x28] sm:$0xff]  ;;  %s279_s15 = sshll.u32 %s488_s9, 4  ;;  %s280_s15 = int_to_ptr.vmem [resolvable:$true] %s279_s15 }
  0x3b   : > { %v202_v11 = vmul.f32 %v132_v4, %v132_v4  ;;  %v203_v15 = vmul.f32 %v133_v9, %v133_v9  ;;  %v135_v17 = vld [vmem:[%s578_s19 + $0x30] sm:$0xff]  ;;  %v204_v19 = vmul.f32 %v134_v13, %v134_v13  ;;  %v136_v21 = vld [vmem:[%s578_s19 + $0x38] sm:$0xff]  ;;  %v137_v25 = vld [vmem:[%s578_s19 + $0x40] sm:$0xff]  ;;  %s420_s20 = scalar_lea.vmem %s280_s15, 32  ;;  %p427_p4 = scmp.lt.s32.totalorder %s280_s15, %s280_s15 }
  0x3c   : > { %v163_v10 = vadd.f32 %v162_v5, %v131_v3  ;;  %v231_v12 = vadd.f32 %v200_v7, %v199_v6  ;;  %v205_v23 = vmul.f32 %v135_v17, %v135_v17  ;;  %v206_v27 = vmul.f32 %v136_v21, %v136_v21  ;;  %v138_v29 = vld [vmem:[%s578_s19 + $0x48] sm:$0xff]  ;;  %v139_v33 = vld [vmem:[%s578_s19 + $0x50] sm:$0xff]  ;;  %v140_v37 = vld [vmem:[%s578_s19 + $0x58] sm:$0xff]  ;;  %p421_p1 = scmp.ne.s32.totalorder %s280_s15, %s420_s20  ;;  %p428_p5 = scmp.lt.s32.totalorder %s420_s20, %s420_s20 }
  0x3d   : > { %v207_v31 = vmul.f32 %v137_v25, %v137_v25  ;;  %v208_v35 = vmul.f32 %v138_v29, %v138_v29  ;;  %v209_v39 = vmul.f32 %v139_v33, %v139_v33  ;;  %v141_v41 = vld [vmem:[%s578_s19 + $0x60] sm:$0xff]  ;;  %v210_v43 = vmul.f32 %v140_v37, %v140_v37  ;;  %v142_v45 = vld [vmem:[%s578_s19 + $0x68] sm:$0xff]  ;;  %v143_v49 = vld [vmem:[%s578_s19 + $0x70] sm:$0xff] }
  0x3e   : > { %v164_v14 = vadd.f32 %v163_v10, %v132_v4  ;;  %v232_v16 = vadd.f32 %v231_v12, %v201_v8  ;;  %v211_v47 = vmul.f32 %v141_v41, %v141_v41  ;;  %v212_v51 = vmul.f32 %v142_v45, %v142_v45  ;;  %v144_v53 = vld [vmem:[%s578_s19 + $0x78] sm:$0xff]  ;;  %v145_v57 = vld [vmem:[%s578_s19 + $0x80] sm:$0xff]  ;;  %v146_v61 = vld [vmem:[%s578_s19 + $0x88] sm:$0xff]  ;;  %p422_p2 = pnand %p421_p1, %p354_p8  ;;  %p429_p6 = por %p428_p5, %p427_p4 }
  0x3f   : > { %v213_v55 = vmul.f32 %v143_v49, %v143_v49  ;;  %v214_v59 = vmul.f32 %v144_v53, %v144_v53  ;;  %v215_v63 = vmul.f32 %v145_v57, %v145_v57  ;;  %v147_v1 = vld [vmem:[%s578_s19 + $0x90] sm:$0xff]  ;;  %v216_v3 = vmul.f32 %v146_v61, %v146_v61  ;;  %v148_v5 = vld [vmem:[%s578_s19 + $0x98] sm:$0xff] }
  0x40   : > { %v165_v18 = vadd.f32 %v164_v14, %v133_v9  ;;  %v233_v20 = vadd.f32 %v232_v16, %v202_v11  ;;  %v217_v7 = vmul.f32 %v147_v1, %v147_v1  ;;  %v149_v9 = vld [vmem:[%s578_s19 + $0xa0] sm:$0xff]  ;;  %v218_v11 = vmul.f32 %v148_v5, %v148_v5  ;;  %p423_p3 = pneg %p422_p2 }
  0x42   : > { %v166_v22 = vadd.f32 %v165_v18, %v134_v13  ;;  %v234_v24 = vadd.f32 %v233_v20, %v203_v15  ;;  %v150_v13 = vld [vmem:[%s578_s19 + $0xa8] sm:$0xff]  ;;  %v219_v15 = vmul.f32 %v149_v9, %v149_v9  ;;  %p430_p10 = pnand %p429_p6, %p423_p3 }
  0x44   : > { %v167_v26 = vadd.f32 %v166_v22, %v135_v17  ;;  %v235_v28 = vadd.f32 %v234_v24, %v204_v19  ;;  %v151_v17 = vld [vmem:[%s578_s19 + $0xb0] sm:$0xff]  ;;  %v220_v19 = vmul.f32 %v150_v13, %v150_v13 }
  0x46   : > { %v168_v30 = vadd.f32 %v167_v26, %v136_v21  ;;  %v236_v32 = vadd.f32 %v235_v28, %v205_v23  ;;  %v152_v21 = vld [vmem:[%s578_s19 + $0xb8] sm:$0xff]  ;;  %v221_v23 = vmul.f32 %v151_v17, %v151_v17 }
  0x48   : > { %v169_v34 = vadd.f32 %v168_v30, %v137_v25  ;;  %v237_v36 = vadd.f32 %v236_v32, %v206_v27  ;;  %v153_v25 = vld [vmem:[%s578_s19 + $0xc0] sm:$0xff]  ;;  %v222_v27 = vmul.f32 %v152_v21, %v152_v21 }
  0x4a   : > { %v170_v38 = vadd.f32 %v169_v34, %v138_v29  ;;  %v238_v40 = vadd.f32 %v237_v36, %v207_v31  ;;  %v154_v29 = vld [vmem:[%s578_s19 + $0xc8] sm:$0xff]  ;;  %v223_v31 = vmul.f32 %v153_v25, %v153_v25 }
  0x4c   : > { %v171_v42 = vadd.f32 %v170_v38, %v139_v33  ;;  %v239_v44 = vadd.f32 %v238_v40, %v208_v35  ;;  %v155_v33 = vld [vmem:[%s578_s19 + $0xd0] sm:$0xff]  ;;  %v224_v35 = vmul.f32 %v154_v29, %v154_v29 }
  0x4e   : > { %v172_v46 = vadd.f32 %v171_v42, %v140_v37  ;;  %v240_v48 = vadd.f32 %v239_v44, %v209_v39  ;;  %v156_v37 = vld [vmem:[%s578_s19 + $0xd8] sm:$0xff]  ;;  %v225_v39 = vmul.f32 %v155_v33, %v155_v33 }
  0x50   : > { %v173_v50 = vadd.f32 %v172_v46, %v141_v41  ;;  %v241_v52 = vadd.f32 %v240_v48, %v210_v43  ;;  %v157_v41 = vld [vmem:[%s578_s19 + $0xe0] sm:$0xff]  ;;  %v226_v43 = vmul.f32 %v156_v37, %v156_v37 }
  0x52   : > { %v174_v54 = vadd.f32 %v173_v50, %v142_v45  ;;  %v242_v56 = vadd.f32 %v241_v52, %v211_v47  ;;  %v158_v45 = vld [vmem:[%s578_s19 + $0xe8] sm:$0xff]  ;;  %v227_v47 = vmul.f32 %v157_v41, %v157_v41 }
  0x54   : > { %v175_v58 = vadd.f32 %v174_v54, %v143_v49  ;;  %v243_v60 = vadd.f32 %v242_v56, %v212_v51  ;;  %v159_v49 = vld [vmem:[%s578_s19 + $0xf0] sm:$0xff]  ;;  %v228_v51 = vmul.f32 %v158_v45, %v158_v45 }
  0x56   : > { %v176_v62 = vadd.f32 %v175_v58, %v144_v53  ;;  %v244_v0 = vadd.f32 %v243_v60, %v213_v55  ;;  %v160_v53 = vld [vmem:[%s578_s19 + $0xf8] sm:$0xff]  ;;  %v229_v55 = vmul.f32 %v159_v49, %v159_v49 }
  0x57   : > { %v230_v58 = vmul.f32 %v160_v53, %v160_v53 }
  0x58   : > { %v177_v2 = vadd.f32 %v176_v62, %v145_v57  ;;  %v245_v4 = vadd.f32 %v244_v0, %v214_v59 }
  0x5a   : > { %v178_v6 = vadd.f32 %v177_v2, %v146_v61  ;;  %v246_v8 = vadd.f32 %v245_v4, %v215_v63 }
  0x5c   : > { %v179_v10 = vadd.f32 %v178_v6, %v147_v1  ;;  %v247_v12 = vadd.f32 %v246_v8, %v216_v3 }
  0x5e   : > { %v180_v14 = vadd.f32 %v179_v10, %v148_v5  ;;  %v248_v16 = vadd.f32 %v247_v12, %v217_v7  ;;  %v161_v10 = vld [vmem:[#allocation5] sm:$0x3] }
  0x60   : > { %v181_v18 = vadd.f32 %v180_v14, %v149_v9  ;;  %v249_v20 = vadd.f32 %v248_v16, %v218_v11 }
  0x62   : > { %v182_v22 = vadd.f32 %v181_v18, %v150_v13  ;;  %v250_v24 = vadd.f32 %v249_v20, %v219_v15 }
  0x64   : > { %v183_v26 = vadd.f32 %v182_v22, %v151_v17  ;;  %v251_v28 = vadd.f32 %v250_v24, %v220_v19 }
  0x66   : > { %v184_v30 = vadd.f32 %v183_v26, %v152_v21  ;;  %v252_v32 = vadd.f32 %v251_v28, %v221_v23 }
  0x68   : > { %v185_v34 = vadd.f32 %v184_v30, %v153_v25  ;;  %v253_v36 = vadd.f32 %v252_v32, %v222_v27 }
  0x6a   : > { %v186_v38 = vadd.f32 %v185_v34, %v154_v29  ;;  %v254_v40 = vadd.f32 %v253_v36, %v223_v31 }
  0x6c   : > { %v187_v42 = vadd.f32 %v186_v38, %v155_v33  ;;  %v255_v44 = vadd.f32 %v254_v40, %v224_v35 }
  0x6e   : > { %v188_v46 = vadd.f32 %v187_v42, %v156_v37  ;;  %v256_v48 = vadd.f32 %v255_v44, %v225_v39 }
  0x70   : > { %v189_v50 = vadd.f32 %v188_v46, %v157_v41  ;;  %v257_v52 = vadd.f32 %v256_v48, %v226_v43 }
  0x72   : > { %v190_v54 = vadd.f32 %v189_v50, %v158_v45  ;;  %v258_v56 = vadd.f32 %v257_v52, %v227_v47 }
  0x74   : > { %v191_v57 = vadd.f32 %v190_v54, %v159_v49  ;;  %v259_v59 = vadd.f32 %v258_v56, %v228_v51 }
  0x76   : > { %v192_v60 = vadd.f32 %v191_v57, %v160_v53  ;;  %v260_v61 = vadd.f32 %v259_v59, %v229_v55 }
  0x78   : > { %v193_v62 = vrot.slane %v192_v60, 4  ;;  %v261_v63 = vadd.f32 %v260_v61, %v230_v58 }
  0x7a   : > { %v194_v0 = vadd.f32 %v193_v62, %v192_v60  ;;  %v262_v1 = vrot.slane %v261_v63, 4 }
  0x7c   : > { %v195_v2 = vrot.slane %v194_v0, 2  ;;  %v263_v3 = vadd.f32 %v262_v1, %v261_v63 }
  0x7e   : > { %v196_v4 = vadd.f32 %v195_v2, %v194_v0  ;;  %v264_v5 = vrot.slane %v263_v3, 2 }
  0x80   : > { %v197_v6 = vrot.slane %v196_v4, 1  ;;  %v265_v7 = vadd.f32 %v264_v5, %v263_v3 }
  0x82   : > { %v198_v8 = vadd.f32 %v197_v6, %v196_v4  ;;  %v266_v9 = vrot.slane %v265_v7, 1 }
  0x84   : > { %v267_v11 = vadd.f32 %v266_v9, %v265_v7 }
  0x86   : > { %v269_v12 = vsel %vm268_vm0, %v198_v8, %v267_v11 }
  0x87   : > { %v270_v13 = vadd.f32 %v269_v12, %v161_v10 }
  0x89   : > { %271 = vst [vmem:[#allocation5] sm:$0x3] %v270_v13 }
  0x8a   : > { %433 = shalt.err (!%p430_p10)
}
  0x8b   : > { %346 = dma.vmem_to_hbm [thread:$0]  (%p354_p8), %s280_s15, 32, %s643_s1, [#allocation4]  }
  0x8c   : > { %465 = dma.done.wait (%p354_p8), [#allocation4], 32  }
  0x8d   : > { %467 = vsyncadd (%p354_p8), [#allocation4], 4294967264 }
  0x8e PF: > { %p12_p12 = scmp.ge.s32.totalorder %s521_s11, 4   ;;  %s649_s6 = smov %s474_s7 }
  0x8f   : > { %s650_s7 = smov %s478_s8  ;;  %s651_s8 = smov %s531_s14 }
  0x90   : > { %s652_s9 = smov %s521_s11  ;;  %14 = sbr.rel (!%p12_p12) target bundleno = 4 (0x4), region = 65 }
  0x95   :  { %292 = vsyncpa [#allocation3], 1 }
  0x96   :  { %294 = vsyncpa [#allocation3 + $0x1], 1 }
  0x97   :  { %295 = vsyncpa [#allocation4], 1 }
  0x98   :  { %297 = vsyncpa [#allocation4 + $0x1], 1 }

</bundles_post_ra>
